<compile_context>
chip_gen: v5e
topology: v5e:2x2
jax: 0.10.0
libtpu: 0.0.40
codegen_flags: <defaults>
</compile_context>

<pallas_src>
import functools

import jax
import jax.numpy as jnp
from jax.experimental import pallas as pl
from jax.experimental.pallas import tpu as pltpu

HID_SIZE = 32
_LANE = 128        # lane width / MXU tile edge
_SUBLANE = 8       # f32 sublane packing
_NEG_BIG = -1e30   # bias for padded action columns -> vanishes under softmax


def _round_up(n: int, m: int) -> int:
    return ((n + m - 1) // m) * m


def policy_net_kernel(x_ref, w1_ref, b1_ref, w2_ref, b2_ref, out_ref):
    # x: (TB, OBS_P), w1: (OBS_P, HID_P), b1: (1, HID_P),
    # w2: (HID_P, ACT_P), b2: (1, ACT_P), out: (TB, ACT_P)
    x = x_ref[...]

    # Linear 1 + ReLU (MXU matmul, f32 accumulation)
    h = jnp.dot(x, w1_ref[...], preferred_element_type=jnp.float32) + b1_ref[...]
    h = jnp.maximum(h, 0.0)

    # Linear 2 (padded action columns carry bias -1e30 -> exp underflows to 0)
    logits = jnp.dot(h, w2_ref[...], preferred_element_type=jnp.float32) + b2_ref[...]

    # Numerically-stable softmax over the last (lane) axis.
    m = jnp.max(logits, axis=-1, keepdims=True)
    e = jnp.exp(logits - m)
    denom = jnp.sum(e, axis=-1, keepdims=True)
    out_ref[...] = (e * pl.reciprocal(denom, approx=True)).astype(out_ref.dtype)


@functools.partial(jax.jit, static_argnames=("block_b",))
def policy_net_forward(x, w1, b1, w2, b2, *, block_b=256):
    """x: (B, obs) f32.  Weights pre-transposed to (in, out):
    w1: (obs, HID), b1: (HID,)/(1, HID), w2: (HID, act), b2: (act,)/(1, act).
    Returns softmax probabilities of shape (B, act)."""
    B, obs = x.shape
    hid = w1.shape[1]
    act = w2.shape[1]

    b1 = b1.reshape(1, hid)
    b2 = b2.reshape(1, act)

    # --- pad feature dims to the 128-lane / MXU boundary --------------------
    obs_p = _round_up(obs, _LANE)
    hid_p = _round_up(hid, _LANE)
    act_p = _round_up(act, _LANE)

    x_p = jnp.pad(x, ((0, 0), (0, obs_p - obs)))
    w1_p = jnp.pad(w1, ((0, obs_p - obs), (0, hid_p - hid)))
    b1_p = jnp.pad(b1, ((0, 0), (0, hid_p - hid)))
    w2_p = jnp.pad(w2, ((0, hid_p - hid), (0, act_p - act)))
    # Padded action columns get a huge negative bias so softmax sends them to 0.
    b2_p = jnp.pad(b2, ((0, 0), (0, act_p - act)), constant_values=_NEG_BIG)

    # --- pad + tile the batch dimension --------------------------------------
    tb = min(block_b, _round_up(B, _SUBLANE))     # batch tile (multiple of 8)
    b_pad = _round_up(B, tb)
    x_p = jnp.pad(x_p, ((0, b_pad - B), (0, 0)))

    grid = (b_pad // tb,)

    out = pl.pallas_call(
        policy_net_kernel,
        out_shape=jax.ShapeDtypeStruct((b_pad, act_p), jnp.float32),
        grid=grid,
        in_specs=[
            pl.BlockSpec((tb, obs_p), lambda i: (i, 0)),      # x: batch-tiled
            pl.BlockSpec((obs_p, hid_p), lambda i: (0, 0)),   # weights resident
            pl.BlockSpec((1, hid_p), lambda i: (0, 0)),
            pl.BlockSpec((hid_p, act_p), lambda i: (0, 0)),
            pl.BlockSpec((1, act_p), lambda i: (0, 0)),
        ],
        out_specs=pl.BlockSpec((tb, act_p), lambda i: (i, 0)),  # lane-dense store
        compiler_params=pltpu.CompilerParams(
            dimension_semantics=("parallel",),                  # v7x: shard over 2 TCs
        ),
    )(x_p, w1_p, b1_p, w2_p, b2_p)

    return out[:B, :act]


def init_params(key, obs_size, action_size):
    """Deterministic init mimicking PyTorch nn.Linear default (uniform +-1/sqrt(fan_in))."""
    k1, k2, k3, k4 = jax.random.split(key, 4)
    bound1 = 1.0 / jnp.sqrt(obs_size)
    bound2 = 1.0 / jnp.sqrt(HID_SIZE)
    # Stored pre-transposed: (in_features, out_features)
    w1 = jax.random.uniform(k1, (obs_size, HID_SIZE), jnp.float32, -bound1, bound1)
    b1 = jax.random.uniform(k2, (1, HID_SIZE), jnp.float32, -bound1, bound1)
    w2 = jax.random.uniform(k3, (HID_SIZE, action_size), jnp.float32, -bound2, bound2)
    b2 = jax.random.uniform(k4, (1, action_size), jnp.float32, -bound2, bound2)
    return w1, b1, w2, b2


if __name__ == "__main__":
    key = jax.random.PRNGKey(0)
    k_x, k_p = jax.random.split(key)

    batch = 2
    obs_size = 16
    action_size = 8

    x = jax.random.normal(k_x, (batch, obs_size), jnp.float32)
    w1, b1, w2, b2 = init_params(k_p, obs_size, action_size)

    def reference(xv):
        h = jnp.maximum(xv @ w1 + b1, 0.0)
        return jax.nn.softmax(h @ w2 + b2, axis=1)

    out = policy_net_forward(x, w1, b1, w2, b2)
    out = jax.block_until_ready(out)

    ref = reference(x)
    assert out.shape == (batch, action_size)
    # approx-reciprocal softmax divide -> slightly looser tolerance
    assert jnp.allclose(out, ref, atol=1e-3, rtol=1e-3)
    assert jnp.allclose(jnp.sum(out, axis=1), 1.0, atol=1e-3)

    # Also exercise a multi-block batch grid (padding + tiling path).
    x2 = jax.random.normal(jax.random.PRNGKey(1), (257, obs_size), jnp.float32)
    out2 = jax.block_until_ready(policy_net_forward(x2, w1, b1, w2, b2))
    ref2 = reference(x2)
    assert out2.shape == (257, action_size)
    assert jnp.allclose(out2, ref2, atol=1e-3, rtol=1e-3)
    assert jnp.allclose(jnp.sum(out2, axis=1), 1.0, atol=1e-3)

    print("KERNEL_OK")
</pallas_src>

<mosaic_0001>
module attributes {stable_mosaic.version = 11 : i64} {
  func.func @policy_net_kernel(%arg0: i32, %arg1: memref<8x128xf32, #tpu.memory_space<vmem>>, %arg2: memref<128x128xf32, #tpu.memory_space<vmem>>, %arg3: memref<1x128xf32, #tpu.memory_space<vmem>>, %arg4: memref<128x128xf32, #tpu.memory_space<vmem>>, %arg5: memref<1x128xf32, #tpu.memory_space<vmem>>, %arg6: memref<8x128xf32, #tpu.memory_space<vmem>>) attributes {dimension_semantics = [#tpu.dimension_semantics<parallel>], iteration_bounds = array<i64: 1>, scalar_prefetch = 0 : i64, scratch_operands = 0 : i64, tpu.core_type = #tpu.core_type<tc>, window_params = [{transform_indices = @transform_0, window_bounds = array<i64: 8, 128>}, {pipeline_mode = #tpu.pipeline_mode<synchronous>, transform_indices = @transform_1, window_bounds = array<i64: 128, 128>}, {pipeline_mode = #tpu.pipeline_mode<synchronous>, transform_indices = @transform_2, window_bounds = array<i64: 1, 128>}, {pipeline_mode = #tpu.pipeline_mode<synchronous>, transform_indices = @transform_3, window_bounds = array<i64: 128, 128>}, {pipeline_mode = #tpu.pipeline_mode<synchronous>, transform_indices = @transform_4, window_bounds = array<i64: 1, 128>}, {transform_indices = @transform_5, window_bounds = array<i64: 8, 128>}]} {
    %c0 = arith.constant 0 : index
    %c0_0 = arith.constant 0 : index
    %0 = vector.load %arg1[%c0, %c0_0] : memref<8x128xf32, #tpu.memory_space<vmem>>, vector<8x128xf32>
    %c0_1 = arith.constant 0 : index
    %c0_2 = arith.constant 0 : index
    %1 = vector.load %arg2[%c0_1, %c0_2] : memref<128x128xf32, #tpu.memory_space<vmem>>, vector<128x128xf32>
    %cst = arith.constant dense<0.000000e+00> : vector<8x128xf32>
    %2 = tpu.matmul %0, %1, %cst {dimension_numbers = #tpu.dot_dimension_numbers<[1], [0], [0], [1], [0, 0, 1, 1], [], []>} : vector<8x128xf32>, vector<128x128xf32>, vector<8x128xf32> -> vector<8x128xf32>
    %c0_3 = arith.constant 0 : index
    %c0_4 = arith.constant 0 : index
    %3 = vector.load %arg3[%c0_3, %c0_4] : memref<1x128xf32, #tpu.memory_space<vmem>>, vector<1x128xf32>
    %4 = vector.broadcast %3 : vector<1x128xf32> to vector<8x128xf32>
    %5 = arith.addf %2, %4 : vector<8x128xf32>
    %cst_5 = arith.constant 0.000000e+00 : f32
    %6 = vector.broadcast %cst_5 : f32 to vector<8x128xf32>
    %7 = arith.maximumf %5, %6 : vector<8x128xf32>
    %c0_6 = arith.constant 0 : index
    %c0_7 = arith.constant 0 : index
    %8 = vector.load %arg4[%c0_6, %c0_7] : memref<128x128xf32, #tpu.memory_space<vmem>>, vector<128x128xf32>
    %cst_8 = arith.constant dense<0.000000e+00> : vector<8x128xf32>
    %9 = tpu.matmul %7, %8, %cst_8 {dimension_numbers = #tpu.dot_dimension_numbers<[1], [0], [0], [1], [0, 0, 1, 1], [], []>} : vector<8x128xf32>, vector<128x128xf32>, vector<8x128xf32> -> vector<8x128xf32>
    %c0_9 = arith.constant 0 : index
    %c0_10 = arith.constant 0 : index
    %10 = vector.load %arg5[%c0_9, %c0_10] : memref<1x128xf32, #tpu.memory_space<vmem>>, vector<1x128xf32>
    %11 = vector.broadcast %10 : vector<1x128xf32> to vector<8x128xf32>
    %12 = arith.addf %9, %11 : vector<8x128xf32>
    %cst_11 = arith.constant dense<0xFF800000> : vector<8xf32>
    %13 = vector.multi_reduction <maximumf>, %12, %cst_11 [1] : vector<8x128xf32> to vector<8xf32>
    %14 = vector.shape_cast %13 : vector<8xf32> to vector<8x1xf32>
    %15 = vector.broadcast %14 : vector<8x1xf32> to vector<8x128xf32>
    %16 = arith.subf %12, %15 : vector<8x128xf32>
    %17 = math.exp %16 : vector<8x128xf32>
    %cst_12 = arith.constant dense<0.000000e+00> : vector<8xf32>
    %18 = vector.multi_reduction <add>, %17, %cst_12 [1] : vector<8x128xf32> to vector<8xf32>
    %19 = vector.shape_cast %18 : vector<8xf32> to vector<8x1xf32>
    %20 = tpu.reciprocal %19 {approx = true} : vector<8x1xf32> -> vector<8x1xf32>
    %21 = vector.broadcast %20 : vector<8x1xf32> to vector<8x128xf32>
    %22 = arith.mulf %17, %21 : vector<8x128xf32>
    %c0_13 = arith.constant 0 : index
    %c0_14 = arith.constant 0 : index
    %23 = vector.load %arg6[%c0_13, %c0_14] : memref<8x128xf32, #tpu.memory_space<vmem>>, vector<8x128xf32>
    tpu.vector_store %arg6[%c0_13, %c0_14], %22 {strides = array<i32>} : memref<8x128xf32, #tpu.memory_space<vmem>>, vector<8x128xf32>,
    return
  }
  func.func @transform_0(%arg0: i32) -> (i32, i32) {
    %c0_i32 = arith.constant 0 : i32
    %c0_i32_0 = arith.constant 0 : i32
    return %arg0, %c0_i32 : i32, i32
  }
  func.func @transform_1(%arg0: i32) -> (i32, i32) {
    %c0_i32 = arith.constant 0 : i32
    %c0_i32_0 = arith.constant 0 : i32
    %c0_i32_1 = arith.constant 0 : i32
    return %c0_i32, %c0_i32_0 : i32, i32
  }
  func.func @transform_2(%arg0: i32) -> (i32, i32) {
    %c0_i32 = arith.constant 0 : i32
    %c0_i32_0 = arith.constant 0 : i32
    %c0_i32_1 = arith.constant 0 : i32
    return %c0_i32, %c0_i32_0 : i32, i32
  }
  func.func @transform_3(%arg0: i32) -> (i32, i32) {
    %c0_i32 = arith.constant 0 : i32
    %c0_i32_0 = arith.constant 0 : i32
    %c0_i32_1 = arith.constant 0 : i32
    return %c0_i32, %c0_i32_0 : i32, i32
  }
  func.func @transform_4(%arg0: i32) -> (i32, i32) {
    %c0_i32 = arith.constant 0 : i32
    %c0_i32_0 = arith.constant 0 : i32
    %c0_i32_1 = arith.constant 0 : i32
    return %c0_i32, %c0_i32_0 : i32, i32
  }
  func.func @transform_5(%arg0: i32) -> (i32, i32) {
    %c0_i32 = arith.constant 0 : i32
    %c0_i32_0 = arith.constant 0 : i32
    return %arg0, %c0_i32 : i32, i32
  }
}

</mosaic_0001>

<bundles_post_ra>
// kernel: policy_net_forward.1
= control target key start
LH: loop header
LB: loop body
LE: loop exit
PB: predicated region body
PF: predicated region fallthrough
CT: control target
= control target key end

     0   :  { %s260_s1 = inlined_call_operand.vmem [shape: f32[128,128], index: 1, kind: input, shape index: {}]   ;;  %s261_s3 = inlined_call_operand.vmem [shape: f32[128,128], index: 3, kind: input, shape index: {}]   ;;  %s262_s2 = inlined_call_operand.vmem [shape: f32[1,128], index: 2, kind: input, shape index: {}]   ;;  %s263_s0 = inlined_call_operand.vmem [shape: f32[8,128], index: 0, kind: input, shape index: {}]   ;;  %s264_s4 = inlined_call_operand.vmem [shape: f32[1,128], index: 4, kind: input, shape index: {}]   ;;  %s265_s5 = inlined_call_operand.vmem [shape: f32[8,128], index: 5, kind: output, shape index: {}]  }
   0x1   :  { %v36_v0 = vld [vmem:[%s260_s1 + $0x78] sm:$0xff]  ;;  %v35_v1 = vld [vmem:[%s260_s1 + $0x70] sm:$0xff]  ;;  %v34_v2 = vld [vmem:[%s260_s1 + $0x68] sm:$0xff] }
   0x2   :  { %41 = vmatpush.msra.mxu0 %v36_v0  ;;  %v33_v3 = vld [vmem:[%s260_s1 + $0x60] sm:$0xff]  ;;  %v77_v4 = vld [vmem:[%s261_s3 + $0x78] sm:$0xff]  ;;  %v76_v6 = vld [vmem:[%s261_s3 + $0x70] sm:$0xff] }
   0x3   :  { %v32_v5 = vld [vmem:[%s260_s1 + $0x58] sm:$0xff]  ;;  %82 = vmatpush.msra.mxu1 %v77_v4  ;;  %v75_v7 = vld [vmem:[%s261_s3 + $0x68] sm:$0xff]  ;;  %v31_v8 = vld [vmem:[%s260_s1 + $0x50] sm:$0xff] }
   0x4   :  { %42 = vmatpush.msra.mxu0 %v35_v1  ;;  %v74_v9 = vld [vmem:[%s261_s3 + $0x60] sm:$0xff]  ;;  %v30_v10 = vld [vmem:[%s260_s1 + $0x48] sm:$0xff]  ;;  %v73_v11 = vld [vmem:[%s261_s3 + $0x58] sm:$0xff] }
   0x5   :  { %83 = vmatpush.msra.mxu1 %v76_v6  ;;  %v29_v12 = vld [vmem:[%s260_s1 + $0x40] sm:$0xff]  ;;  %v72_v13 = vld [vmem:[%s261_s3 + $0x50] sm:$0xff]  ;;  %v28_v14 = vld [vmem:[%s260_s1 + $0x38] sm:$0xff] }
   0x6   :  { %43 = vmatpush.msra.mxu0 %v34_v2  ;;  %v71_v15 = vld [vmem:[%s261_s3 + $0x48] sm:$0xff]  ;;  %v27_v16 = vld [vmem:[%s260_s1 + $0x30] sm:$0xff]  ;;  %v70_v17 = vld [vmem:[%s261_s3 + $0x40] sm:$0xff] }
   0x7   :  { %84 = vmatpush.msra.mxu1 %v75_v7  ;;  %v26_v18 = vld [vmem:[%s260_s1 + $0x28] sm:$0xff]  ;;  %v69_v19 = vld [vmem:[%s261_s3 + $0x38] sm:$0xff]  ;;  %v25_v20 = vld [vmem:[%s260_s1 + $0x20] sm:$0xff] }
   0x8   :  { %44 = vmatpush.msra.mxu0 %v33_v3  ;;  %v68_v21 = vld [vmem:[%s261_s3 + $0x30] sm:$0xff]  ;;  %v24_v22 = vld [vmem:[%s260_s1 + $0x18] sm:$0xff]  ;;  %v67_v23 = vld [vmem:[%s261_s3 + $0x28] sm:$0xff] }
   0x9   :  { %85 = vmatpush.msra.mxu1 %v74_v9  ;;  %v23_v24 = vld [vmem:[%s260_s1 + $0x10] sm:$0xff]  ;;  %v66_v25 = vld [vmem:[%s261_s3 + $0x20] sm:$0xff]  ;;  %v22_v26 = vld [vmem:[%s260_s1 + $0x8] sm:$0xff] }
   0xa   :  { %45 = vmatpush.msra.mxu0 %v32_v5  ;;  %v65_v27 = vld [vmem:[%s261_s3 + $0x18] sm:$0xff]  ;;  %v21_v28 = vld [vmem:[%s260_s1] sm:$0xff]  ;;  %v64_v30 = vld [vmem:[%s261_s3 + $0x10] sm:$0xff] }
   0xb   :  { %86 = vmatpush.msra.mxu1 %v73_v11  ;;  %v20_v29 = vld [vmem:[%s263_s0] sm:$0xff]  ;;  %v63_v31 = vld [vmem:[%s261_s3 + $0x8] sm:$0xff] }
   0xc   :  { %46 = vmatpush.msra.mxu0 %v31_v8  ;;  %v62_v32 = vld [vmem:[%s261_s3] sm:$0xff] }
   0xd   :  { %87 = vmatpush.msra.mxu1 %v72_v13  ;;  %v116_v33 = vld [vmem:[%s262_s2] ss:$0 sm:$0xff] }
   0xe   :  { %47 = vmatpush.msra.mxu0 %v30_v10  ;;  %v117_v37 = vld [vmem:[%s264_s4] ss:$0 sm:$0xff] }
   0xf   :  { %88 = vmatpush.msra.mxu1 %v71_v15 }
  0x10   :  { %48 = vmatpush.msra.mxu0 %v29_v12 }
  0x11   :  { %89 = vmatpush.msra.mxu1 %v70_v17 }
  0x12   :  { %49 = vmatpush.msra.mxu0 %v28_v14 }
  0x13   :  { %90 = vmatpush.msra.mxu1 %v69_v19 }
  0x14   :  { %50 = vmatpush.msra.mxu0 %v27_v16 }
  0x15   :  { %91 = vmatpush.msra.mxu1 %v68_v21 }
  0x16   :  { %51 = vmatpush.msra.mxu0 %v26_v18 }
  0x17   :  { %92 = vmatpush.msra.mxu1 %v67_v23 }
  0x18   :  { %52 = vmatpush.msra.mxu0 %v25_v20 }
  0x19   :  { %93 = vmatpush.msra.mxu1 %v66_v25 }
  0x1a   :  { %53 = vmatpush.msra.mxu0 %v24_v22 }
  0x1b   :  { %94 = vmatpush.msra.mxu1 %v65_v27 }
  0x1c   :  { %54 = vmatpush.msra.mxu0 %v23_v24 }
  0x1d   :  { %95 = vmatpush.msra.mxu1 %v64_v30 }
  0x1e   :  { %55 = vmatpush.msra.mxu0 %v22_v26 }
  0x1f   :  { %96 = vmatpush.msra.mxu1 %v63_v31 }
  0x20   :  { %56 = vmatpush.msra.mxu0 %v21_v28 }
  0x21   :  { %57 = vmatmul.f32.vlgmr.msra.gmra.mxu0 %v20_v29  ;;  %97 = vmatpush.msra.mxu1 %v62_v32 }
  0x9e   :  { %v58_v34 = vpop.f32.mrf.mxu0 }
  0x9f   :  { %v59_v35 = vadd.f32 %v116_v33, %v58_v34 }
  0xa1   :  { %v61_v36 = vmax.f32 %v59_v35, 0.0 }
  0xa3   :  { %98 = vmatmul.f32.vlgmr.msra.gmra.mxu1 %v61_v36 }
 0x120   :  { %v99_v38 = vpop.f32.mrf.mxu1 }
 0x121   :  { %v100_v39 = vadd.f32 %v117_v37, %v99_v38 }
 0x123   :  { %102 = vmax.xlane.f32.xlu0 %v100_v39 }
 0x196   :  { %v103_v40 = vpop.xlane.xlu0 %102 }
 0x197   :  { %v104_v41 = vsub.f32 %v100_v39, %v103_v40 }
 0x199   :  { %v105_v42 = vmul.f32 1.442695, %v104_v41 }
 0x19b   :  { %118 = vpow2.f32 %v105_v42 }
 0x1a1   :  { %v119_v43 = vpop.eup %118 }
 0x1a2   :  { %107 = vadd.xlane.f32.xlu0 %v119_v43 }
 0x215   :  { %v108_v44 = vpop.xlane.xlu0 %107 }
 0x216   :  { %120 = vrcp.f32 %v108_v44 }
 0x21c   :  { %v121_v45 = vpop.eup %120 }
 0x21d   :  { %v110_v46 = vmul.f32 %v121_v45, %v119_v43 }
 0x21f   :  { %111 = vst [vmem:[%s265_s5] sm:$0xff] %v110_v46 }

</bundles_post_ra>
